<compile_context>
chip_gen: v7x
topology: tpu7x:2x2x1
jax: 0.10.0
libtpu: 0.0.40
codegen_flags: <defaults>
</compile_context>

<pallas_src>
import functools

import jax
import jax.numpy as jnp
from jax.experimental import pallas as pl
from jax.experimental.pallas import tpu as pltpu

INPUT_DIM = 4
HIDDEN_DIM = 32
KERNEL_SIZE = 3
SEQ_LEN = 16          # "section_size" L
NUM_SECTIONS = 32     # independent sections processed in one call (B)


# --------------------------------------------------------------------------- #
# Generation-aware configuration helpers
# --------------------------------------------------------------------------- #
def _num_tensorcores():
    """1 TC/chip on v5e/v6e (and older), 2 on v7x."""
    try:
        kind = jax.devices()[0].device_kind.lower()
    except Exception:
        return 1
    if any(t in kind for t in ("v2", "v3", "v4", "v5", "v6")):
        return 1
    if "7" in kind:
        return 2
    return 1


def default_mxu_dtype():
    """bf16 MXU inputs on v6e/v7x (native bf16 VPU); f32 on v5e and older."""
    try:
        kind = jax.devices()[0].device_kind.lower()
    except Exception:
        return jnp.float32
    if any(t in kind for t in ("v2", "v3", "v4", "v5")):
        return jnp.float32
    return jnp.bfloat16


def _pick_block_cols(n_cols, seq_len, n_blocks=None):
    """Whole problem in one block on single-TC chips; 2 lane-dense parallel
    blocks on v7x so the second TensorCore is not idle."""
    if n_blocks is None:
        n_blocks = _num_tensorcores()
    if n_blocks > 1 and n_cols % n_blocks == 0:
        bc = n_cols // n_blocks
        if bc % seq_len == 0 and bc % 128 == 0:
            return bc
    return n_cols


def _pad_rows(din):
    """Din real rows + 1 constant-ones row, rounded up to the 8-sublane tile."""
    return -(-(din + 1) // 8) * 8


# --------------------------------------------------------------------------- #
# Kernel
# --------------------------------------------------------------------------- #
def _gru_cell_kernel(x_ref, h_ref, w_ref, wlh_ref, y_ref, hnew_ref, *,
                     seq_len, kernel_size):
    """One column block (a group of whole sections stacked along lanes).

    x_ref    : (Din_pad, BC) f32   rows: [x (Din), ones, zeros...]
    h_ref    : (H, BC)       f32   hidden state
    w_ref    : (3H, K*Cin_pad)     fused weight (conv taps + conv bias +
                                   linear x-part + linear bias), resident
    wlh_ref  : (H, H)              linear weight for the r*h part, resident
    y_ref    : (H, BC) f32
    hnew_ref : (H, BC) f32         aliased onto the h input buffer in HBM
    """
    x = x_ref[...]
    h = h_ref[...]                              # stays f32 for gate math
    hidden = h.shape[0]
    bc_cols = x.shape[1]
    pad = kernel_size // 2
    mxu_dtype = w_ref.dtype

    # Early cast (no-op for f32): rolls/selects/concat run at half vreg width
    # when the MXU path is bf16 (v6e/v7x); on v5e prepare_params keeps f32.
    combined = jnp.concatenate([x, h], axis=0).astype(mxu_dtype)   # (Cin_pad, BC)

    # Per-section boundary masks: sections are seq_len-wide lane groups and
    # block_cols is a multiple of seq_len, so sections never straddle blocks.
    lane = jax.lax.broadcasted_iota(jnp.int32, (1, bc_cols), 1)
    if seq_len & (seq_len - 1) == 0:            # power of two (static branch)
        pos = lane & (seq_len - 1)
    else:
        pos = lane - (lane // seq_len) * seq_len
    first = pos == 0
    last = pos == (seq_len - 1)

    # im2col: K shifted, replicate-clamped copies of `combined` stacked along the
    # channel (sublane) axis -> all conv taps fuse into ONE MXU matmul.
    taps = [combined]
    left = combined
    for _ in range(pad):
        left = jnp.where(first, combined, pltpu.roll(left, 1, axis=1))
        taps.insert(0, left)
    right = combined
    for _ in range(pad):
        right = jnp.where(last, combined, pltpu.roll(right, bc_cols - 1, axis=1))
        taps.append(right)
    stacked = jnp.concatenate(taps, axis=0)     # (K*Cin_pad, BC), 8-aligned rows

    # Single fused matmul: conv (r,z) + conv bias + linear x-part + linear bias
    # (biases ride on the constant-ones row of x).
    acc = jnp.dot(w_ref[...], stacked, preferred_element_type=jnp.float32)  # (3H, BC)
    r = jax.nn.sigmoid(acc[:hidden, :])
    z = jax.nn.sigmoid(acc[hidden:2 * hidden, :])

    rh = r * h                                   # f32
    # NOTE: the module uses sigmoid (not tanh) for the candidate gate n; matched.
    n = jax.nn.sigmoid(acc[2 * hidden:, :]
                       + jnp.dot(wlh_ref[...], rh.astype(mxu_dtype),
                                 preferred_element_type=jnp.float32))

    y_ref[...] = n
    hnew_ref[...] = (1.0 - z) * n + z * h


# --------------------------------------------------------------------------- #
# One-time weight re-layout (hoisted out of the per-call path)
# --------------------------------------------------------------------------- #
def prepare_params(params, *, mxu_dtype=None):
    """Builds the fused, padded weight slabs.

    Layout of a tap (Cin_pad = Din_pad + H rows):
      rows [0, Din)          : x channels
      row  Din               : constant-ones row (carries the biases)
      rows [Din+1, Din_pad)  : zero padding (sublane alignment)
      rows [Din_pad, Cin_pad): h channels

    w    : (3H, K*Cin_pad)  rows [0,2H) conv weights (+ conv bias on the center
                            tap's ones column), rows [2H,3H) linear x-part +
                            linear bias on the center tap.
    wl_h : (H, H)           linear weight applied to r*h.
    """
    if mxu_dtype is None:
        mxu_dtype = default_mxu_dtype()
    conv_w = jnp.asarray(params["conv_w"], jnp.float32)   # (2H, Cin, K)
    conv_b = jnp.asarray(params["conv_b"], jnp.float32)   # (2H,)
    lin_w = jnp.asarray(params["lin_w"], jnp.float32)     # (H, Cin)
    lin_b = jnp.asarray(params["lin_b"], jnp.float32)     # (H,)

    two_h, cin, ksize = conv_w.shape
    hidden = two_h // 2
    din = cin - hidden
    din_pad = _pad_rows(din)
    cin_pad = din_pad + hidden
    pad = ksize // 2

    w_conv = jnp.zeros((two_h, ksize, cin_pad), jnp.float32)
    w_conv = w_conv.at[:, :, :din].set(jnp.transpose(conv_w[:, :din, :], (0, 2, 1)))
    w_conv = w_conv.at[:, :, din_pad:].set(jnp.transpose(conv_w[:, din:, :], (0, 2, 1)))
    w_conv = w_conv.at[:, pad, din].set(conv_b)            # bias via the ones row

    w_lin = jnp.zeros((hidden, ksize, cin_pad), jnp.float32)
    w_lin = w_lin.at[:, pad, :din].set(lin_w[:, :din])     # x-part, center tap only
    w_lin = w_lin.at[:, pad, din].set(lin_b)               # bias via the ones row

    w_aug = jnp.concatenate([w_conv, w_lin], axis=0).reshape(
        3 * hidden, ksize * cin_pad)

    return {"w": w_aug.astype(mxu_dtype),                  # (3H, K*Cin_pad)
            "wl_h": lin_w[:, din:].astype(mxu_dtype)}      # (H, H)


# --------------------------------------------------------------------------- #
# Lane-dense (layout-persistent) entry point
# --------------------------------------------------------------------------- #
def conv1d_grucell_v1_lane_dense(xs, hs, packed, *, seq_len, block_cols=None):
    """Core call on lane-dense slabs.

    xs : (Din_pad, B*L) f32  built by pack_activations (real x rows + ones row)
    hs : (H, B*L) f32
    Returns (ys, hs_new) in the same layout; hs_new aliases hs's buffer.
    """
    din_pad, n_cols = xs.shape
    hidden = hs.shape[0]
    cin_pad = din_pad + hidden
    w, wlh = packed["w"], packed["wl_h"]
    ksize = w.shape[1] // cin_pad
    assert w.shape == (3 * hidden, ksize * cin_pad)
    assert wlh.shape == (hidden, hidden)
    assert ksize % 2 == 1, "odd kernel_size expected (padding = kernel_size // 2)"
    assert n_cols % seq_len == 0

    if block_cols is None:
        block_cols = _pick_block_cols(n_cols, seq_len)
    assert n_cols % block_cols == 0 and block_cols % seq_len == 0
    grid = (n_cols // block_cols,)

    kernel = functools.partial(_gru_cell_kernel,
                               seq_len=seq_len, kernel_size=ksize)

    def act_spec(rows):
        return pl.BlockSpec((rows, block_cols), lambda j: (0, j))

    def full_spec(shape):
        return pl.BlockSpec(shape, lambda j: (0, 0))   # resident across grid steps

    ys, hs_new = pl.pallas_call(
        kernel,
        grid=grid,
        in_specs=[
            act_spec(din_pad),          # xs
            act_spec(hidden),           # hs (aliased to the h_new output)
            full_spec(w.shape),
            full_spec(wlh.shape),
        ],
        out_specs=(act_spec(hidden), act_spec(hidden)),
        out_shape=(jax.ShapeDtypeStruct((hidden, n_cols), jnp.float32),
                   jax.ShapeDtypeStruct((hidden, n_cols), jnp.float32)),
        input_output_aliases={1: 1},    # h buffer reused in place for h_new
        compiler_params=pltpu.CompilerParams(
            dimension_semantics=("parallel",)),
    )(xs, hs, w, wlh)
    return ys, hs_new


def pack_activations(x, h):
    """(B, C, L) -> lane-dense (C_pad, B*L) slabs; adds the constant-ones row."""
    b, din, seq_len = x.shape
    hidden = h.shape[1]
    n_cols = b * seq_len
    din_pad = _pad_rows(din)
    xr = jnp.transpose(x, (1, 0, 2)).reshape(din, n_cols).astype(jnp.float32)
    xs = jnp.zeros((din_pad, n_cols), jnp.float32)
    xs = xs.at[:din, :].set(xr)
    xs = xs.at[din, :].set(1.0)                            # ones row carries biases
    hs = jnp.transpose(h, (1, 0, 2)).reshape(hidden, n_cols).astype(jnp.float32)
    return xs, hs


def unpack_activations(slab, b, seq_len):
    rows = slab.shape[0]
    return jnp.transpose(slab.reshape(rows, b, seq_len), (1, 0, 2))


# --------------------------------------------------------------------------- #
# Module-shaped convenience wrapper (parity with the PyTorch forward)
# --------------------------------------------------------------------------- #
def conv1d_grucell_v1(x, cur_state, packed, *, block_cols=None):
    """Pallas Conv1d_GRUcell_v1.forward applied independently to B stacked
    sections (B == 1 reproduces the module's batch-1 path)."""
    # TODO(synk): if this cell is driven by an outer per-timestep loop, move the
    # loop into the kernel (timestep grid axis marked "arbitrary", h carried in
    # VMEM scratch) and stay on the lane-dense API so h never round-trips HBM.
    c, h = cur_state
    b, _din, seq_len = x.shape
    xs, hs = pack_activations(x, h)
    ys, hs_new = conv1d_grucell_v1_lane_dense(
        xs, hs, packed, seq_len=seq_len, block_cols=block_cols)
    y = unpack_activations(ys, b, seq_len)
    h_new = unpack_activations(hs_new, b, seq_len)
    return y, (c, h_new)


# --------------------------------------------------------------------------- #
# Pure-JAX reference and parameter init
# --------------------------------------------------------------------------- #
def reference_forward(x, cur_state, params):
    """Pure-JAX mirror of the PyTorch forward, vectorized over sections."""
    c, h = cur_state
    conv_w, conv_b = params["conv_w"], params["conv_b"]
    lin_w, lin_b = params["lin_w"], params["lin_b"]
    hidden = h.shape[1]
    ksize = conv_w.shape[-1]
    pad = ksize // 2
    seq_len = x.shape[-1]

    combined1 = jnp.concatenate([x, h], axis=1)                       # (B, Cin, L)
    padded = jnp.pad(combined1, ((0, 0), (0, 0), (pad, pad)), mode="edge")
    conv = sum(jnp.einsum("oc,bcl->bol", conv_w[:, :, k],
                          padded[:, :, k:k + seq_len])
               for k in range(ksize)) + conv_b[None, :, None]         # (B, 2H, L)
    r = jax.nn.sigmoid(conv[:, :hidden])
    z = jax.nn.sigmoid(conv[:, hidden:])
    combined2 = jnp.concatenate([x, r * h], axis=1)                   # (B, Cin, L)
    cc_n = jnp.einsum("oc,bcl->bol", lin_w, combined2) + lin_b[None, :, None]
    n = jax.nn.sigmoid(cc_n)                                          # (B, H, L)
    h_new = (1 - z) * n + z * h
    return n, (c, h_new)


def init_params(key, input_dim, hidden_dim, kernel_size):
    cin = input_dim + hidden_dim
    k1, k2, k3, k4 = jax.random.split(key, 4)
    bound_c = 1.0 / (cin * kernel_size) ** 0.5
    bound_l = 1.0 / cin ** 0.5
    return {
        "conv_w": jax.random.uniform(k1, (2 * hidden_dim, cin, kernel_size),
                                     jnp.float32, -bound_c, bound_c),
        "conv_b": jax.random.uniform(k2, (2 * hidden_dim,),
                                     jnp.float32, -bound_c, bound_c),
        "lin_w": jax.random.uniform(k3, (hidden_dim, cin),
                                    jnp.float32, -bound_l, bound_l),
        "lin_b": jax.random.uniform(k4, (hidden_dim,),
                                    jnp.float32, -bound_l, bound_l),
    }


if __name__ == "__main__":
    key = jax.random.PRNGKey(0)
    kp, kx, kh = jax.random.split(key, 3)

    params = init_params(kp, INPUT_DIM, HIDDEN_DIM, KERNEL_SIZE)
    x = jax.random.normal(kx, (NUM_SECTIONS, INPUT_DIM, SEQ_LEN), jnp.float32)
    h0 = jax.random.normal(kh, (NUM_SECTIONS, HIDDEN_DIM, SEQ_LEN), jnp.float32)
    cur_state = (None, h0)

    y_ref, (_, h_ref) = reference_forward(x, cur_state, params)

    fwd = jax.jit(conv1d_grucell_v1)

    # f32 MXU path: tight tolerance vs. the reference (not bit-exact -- the fused
    # im2col matmul accumulates in a different order than the per-tap sum).
    packed_f32 = prepare_params(params, mxu_dtype=jnp.float32)
    y, (c_out, h_new) = fwd(x, cur_state, packed_f32)
    jax.block_until_ready((y, h_new))
    assert y.shape == (NUM_SECTIONS, HIDDEN_DIM, SEQ_LEN)
    assert h_new.shape == (NUM_SECTIONS, HIDDEN_DIM, SEQ_LEN)
    assert c_out is None
    assert jnp.allclose(y, y_ref, atol=2e-3, rtol=2e-3)
    assert jnp.allclose(h_new, h_ref, atol=2e-3, rtol=2e-3)

    # Generation-default MXU dtype (bf16 on v6e/v7x, f32 on v5e and older).
    packed_auto = prepare_params(params)
    y2, (_, h2) = fwd(x, cur_state, packed_auto)
    jax.block_until_ready((y2, h2))
    assert jnp.allclose(y2, y_ref, atol=5e-2, rtol=5e-2)
    assert jnp.allclose(h2, h_ref, atol=5e-2, rtol=5e-2)

    # Layout-persistent path: caller keeps x/h/y lane-dense across calls
    # (no wrapper transpose/reshape; h buffer is aliased in place).
    xs, hs = pack_activations(x, h0)
    lane_fwd = jax.jit(functools.partial(conv1d_grucell_v1_lane_dense,
                                         seq_len=SEQ_LEN))
    ys_l, hs_l = lane_fwd(xs, hs, packed_auto)
    jax.block_until_ready((ys_l, hs_l))
    assert jnp.allclose(unpack_activations(ys_l, NUM_SECTIONS, SEQ_LEN),
                        y_ref, atol=5e-2, rtol=5e-2)
    assert jnp.allclose(unpack_activations(hs_l, NUM_SECTIONS, SEQ_LEN),
                        h_ref, atol=5e-2, rtol=5e-2)

    print("KERNEL_OK")
</pallas_src>

<mosaic_0001>
module attributes {stable_mosaic.version = 11 : i64} {
  func.func @_gru_cell_kernel(%arg0: i32, %arg1: memref<8x512xf32, #tpu.memory_space<vmem>>, %arg2: memref<32x512xf32, #tpu.memory_space<vmem>>, %arg3: memref<96x120xf32, #tpu.memory_space<vmem>>, %arg4: memref<32x32xf32, #tpu.memory_space<vmem>>, %arg5: memref<32x512xf32, #tpu.memory_space<vmem>>, %arg6: memref<32x512xf32, #tpu.memory_space<vmem>>) attributes {dimension_semantics = [#tpu.dimension_semantics<parallel>], iteration_bounds = array<i64: 1>, scalar_prefetch = 0 : i64, scratch_operands = 0 : i64, tpu.core_type = #tpu.core_type<tc>, window_params = [{transform_indices = @transform_0, window_bounds = array<i64: 8, 512>}, {transform_indices = @transform_1, window_bounds = array<i64: 32, 512>}, {pipeline_mode = #tpu.pipeline_mode<synchronous>, transform_indices = @transform_2, window_bounds = array<i64: 96, 120>}, {pipeline_mode = #tpu.pipeline_mode<synchronous>, transform_indices = @transform_3, window_bounds = array<i64: 32, 32>}, {transform_indices = @transform_4, window_bounds = array<i64: 32, 512>}, {transform_indices = @transform_5, window_bounds = array<i64: 32, 512>}]} {
    %c0 = arith.constant 0 : index
    %c0_0 = arith.constant 0 : index
    %0 = vector.load %arg1[%c0, %c0_0] : memref<8x512xf32, #tpu.memory_space<vmem>>, vector<8x512xf32>
    %c0_1 = arith.constant 0 : index
    %c0_2 = arith.constant 0 : index
    %1 = vector.load %arg2[%c0_1, %c0_2] : memref<32x512xf32, #tpu.memory_space<vmem>>, vector<32x512xf32>
    %2 = tpu.concatenate %0, %1 in 0 : vector<8x512xf32>, vector<32x512xf32> -> vector<40x512xf32>
    %3 = tpu.iota {dimensions = array<i32: 1>} : vector<1x512xi32>
    %c15_i32 = arith.constant 15 : i32
    %4 = vector.broadcast %c15_i32 : i32 to vector<1x512xi32>
    %5 = arith.andi %3, %4 : vector<1x512xi32>
    %c0_i32 = arith.constant 0 : i32
    %6 = vector.broadcast %c0_i32 : i32 to vector<1x512xi32>
    %7 = arith.cmpi eq, %5, %6 : vector<1x512xi32>
    %c15_i32_3 = arith.constant 15 : i32
    %8 = vector.broadcast %c15_i32_3 : i32 to vector<1x512xi32>
    %9 = arith.cmpi eq, %5, %8 : vector<1x512xi32>
    %c1_i32 = arith.constant 1 : i32
    %10 = tpu.dynamic_rotate %2 by %c1_i32 dim 1 : vector<40x512xf32>, i32 -> vector<40x512xf32>
    %11 = vector.shape_cast %7 : vector<1x512xi1> to vector<1x512xi1>
    %12 = vector.broadcast %11 : vector<1x512xi1> to vector<40x512xi1>
    %13 = arith.select %12, %2, %10 : vector<40x512xi1>, vector<40x512xf32>
    %c511_i32 = arith.constant 511 : i32
    %14 = tpu.dynamic_rotate %2 by %c511_i32 dim 1 : vector<40x512xf32>, i32 -> vector<40x512xf32>
    %15 = vector.shape_cast %9 : vector<1x512xi1> to vector<1x512xi1>
    %16 = vector.broadcast %15 : vector<1x512xi1> to vector<40x512xi1>
    %17 = arith.select %16, %2, %14 : vector<40x512xi1>, vector<40x512xf32>
    %18 = tpu.concatenate %13, %2, %17 in 0 : vector<40x512xf32>, vector<40x512xf32>, vector<40x512xf32> -> vector<120x512xf32>
    %c0_4 = arith.constant 0 : index
    %c0_5 = arith.constant 0 : index
    %19 = vector.load %arg3[%c0_4, %c0_5] : memref<96x120xf32, #tpu.memory_space<vmem>>, vector<96x120xf32>
    %cst = arith.constant dense<0.000000e+00> : vector<96x512xf32>
    %20 = tpu.matmul %19, %18, %cst {dimension_numbers = #tpu.dot_dimension_numbers<[1], [0], [0], [1], [0, 0, 1, 1], [], []>} : vector<96x120xf32>, vector<120x512xf32>, vector<96x512xf32> -> vector<96x512xf32>
    %21 = vector.extract_strided_slice %20 {offsets = [0, 0], sizes = [32, 512], strides = [1, 1]} : vector<96x512xf32> to vector<32x512xf32>
    %22 = arith.negf %21 : vector<32x512xf32>
    %23 = math.exp %22 : vector<32x512xf32>
    %cst_6 = arith.constant 1.000000e+00 : f32
    %24 = vector.broadcast %cst_6 : f32 to vector<32x512xf32>
    %25 = arith.addf %24, %23 : vector<32x512xf32>
    %26 = arith.divf %24, %25 : vector<32x512xf32>
    %27 = vector.extract_strided_slice %20 {offsets = [32, 0], sizes = [32, 512], strides = [1, 1]} : vector<96x512xf32> to vector<32x512xf32>
    %28 = arith.negf %27 : vector<32x512xf32>
    %29 = math.exp %28 : vector<32x512xf32>
    %cst_7 = arith.constant 1.000000e+00 : f32
    %30 = vector.broadcast %cst_7 : f32 to vector<32x512xf32>
    %31 = arith.addf %30, %29 : vector<32x512xf32>
    %32 = arith.divf %30, %31 : vector<32x512xf32>
    %33 = arith.mulf %26, %1 : vector<32x512xf32>
    %34 = vector.extract_strided_slice %20 {offsets = [64, 0], sizes = [32, 512], strides = [1, 1]} : vector<96x512xf32> to vector<32x512xf32>
    %c0_8 = arith.constant 0 : index
    %c0_9 = arith.constant 0 : index
    %35 = vector.load %arg4[%c0_8, %c0_9] : memref<32x32xf32, #tpu.memory_space<vmem>>, vector<32x32xf32>
    %cst_10 = arith.constant dense<0.000000e+00> : vector<32x512xf32>
    %36 = tpu.matmul %35, %33, %cst_10 {dimension_numbers = #tpu.dot_dimension_numbers<[1], [0], [0], [1], [0, 0, 1, 1], [], []>} : vector<32x32xf32>, vector<32x512xf32>, vector<32x512xf32> -> vector<32x512xf32>
    %37 = arith.addf %34, %36 : vector<32x512xf32>
    %38 = arith.negf %37 : vector<32x512xf32>
    %39 = math.exp %38 : vector<32x512xf32>
    %cst_11 = arith.constant 1.000000e+00 : f32
    %40 = vector.broadcast %cst_11 : f32 to vector<32x512xf32>
    %41 = arith.addf %40, %39 : vector<32x512xf32>
    %42 = arith.divf %40, %41 : vector<32x512xf32>
    %c0_12 = arith.constant 0 : index
    %c0_13 = arith.constant 0 : index
    %43 = vector.load %arg5[%c0_12, %c0_13] : memref<32x512xf32, #tpu.memory_space<vmem>>, vector<32x512xf32>
    tpu.vector_store %arg5[%c0_12, %c0_13], %42 {strides = array<i32>} : memref<32x512xf32, #tpu.memory_space<vmem>>, vector<32x512xf32>,
    %cst_14 = arith.constant 1.000000e+00 : f32
    %44 = vector.broadcast %cst_14 : f32 to vector<32x512xf32>
    %45 = arith.subf %44, %32 : vector<32x512xf32>
    %46 = arith.mulf %45, %42 : vector<32x512xf32>
    %47 = arith.mulf %32, %1 : vector<32x512xf32>
    %48 = arith.addf %46, %47 : vector<32x512xf32>
    %c0_15 = arith.constant 0 : index
    %c0_16 = arith.constant 0 : index
    %49 = vector.load %arg6[%c0_15, %c0_16] : memref<32x512xf32, #tpu.memory_space<vmem>>, vector<32x512xf32>
    tpu.vector_store %arg6[%c0_15, %c0_16], %48 {strides = array<i32>} : memref<32x512xf32, #tpu.memory_space<vmem>>, vector<32x512xf32>,
    return
  }
  func.func @transform_0(%arg0: i32) -> (i32, i32) {
    %c0_i32 = arith.constant 0 : i32
    %c0_i32_0 = arith.constant 0 : i32
    return %c0_i32, %arg0 : i32, i32
  }
  func.func @transform_1(%arg0: i32) -> (i32, i32) {
    %c0_i32 = arith.constant 0 : i32
    %c0_i32_0 = arith.constant 0 : i32
    return %c0_i32, %arg0 : i32, i32
  }
  func.func @transform_2(%arg0: i32) -> (i32, i32) {
    %c0_i32 = arith.constant 0 : i32
    %c0_i32_0 = arith.constant 0 : i32
    %c0_i32_1 = arith.constant 0 : i32
    return %c0_i32, %c0_i32_0 : i32, i32
  }
  func.func @transform_3(%arg0: i32) -> (i32, i32) {
    %c0_i32 = arith.constant 0 : i32
    %c0_i32_0 = arith.constant 0 : i32
    %c0_i32_1 = arith.constant 0 : i32
    return %c0_i32, %c0_i32_0 : i32, i32
  }
  func.func @transform_4(%arg0: i32) -> (i32, i32) {
    %c0_i32 = arith.constant 0 : i32
    %c0_i32_0 = arith.constant 0 : i32
    return %c0_i32, %arg0 : i32, i32
  }
  func.func @transform_5(%arg0: i32) -> (i32, i32) {
    %c0_i32 = arith.constant 0 : i32
    %c0_i32_0 = arith.constant 0 : i32
    return %c0_i32, %arg0 : i32, i32
  }
}

</mosaic_0001>

<bundles_post_ra>
// kernel: conv1d_grucell_v1.1
= control target key start
LH: loop header
LB: loop body
LE: loop exit
PB: predicated region body
PF: predicated region fallthrough
CT: control target
= control target key end

     0   :  { %s1645_s9 = smov 1   ;;  %s1646_s8 = smov 127   ;;  %v1647_v30 = vmov 0.0   ;;  %v39_v31 = vlaneseq  ;;  %vm246_vm10 = vcmask 982016   ;;  %vm769_vm11 = vcmask 261120   ;;  %s2441_s0 = inlined_call_operand.vmem [shape: f32[8,512], index: 0, kind: input, shape index: {}]   ;;  %s2442_s1 = inlined_call_operand.vmem [shape: f32[32,512], index: 1, kind: input, shape index: {}, may-alias: {1,5}]   ;;  %s2443_s2 = inlined_call_operand.vmem [shape: f32[96,120], index: 2, kind: input, shape index: {}]   ;;  %s2444_s3 = inlined_call_operand.vmem [shape: f32[32,32], index: 3, kind: input, shape index: {}]   ;;  %s2445_s4 = inlined_call_operand.vmem [shape: f32[32,512], index: 4, kind: output, shape index: {0}]   ;;  %s2446_s5 = inlined_call_operand.vmem [shape: f32[32,512], index: 5, kind: output, shape index: {1}, may-alias: {1,5}]  }
   0x1   :  { %v1681_v0 = vld [vmem:[%s2441_s0 + $0x10] sm:$0xff]  ;;  %v1691_v2 = vld [vmem:[%s2441_s0] sm:$0xff]  ;;  %v1703_v5 = vld [vmem:[%s2441_s0 + $0x18] sm:$0xff]  ;;  %347 = vmatprep.mubr.f32.mxu0 %v1647_v30  ;;  %484 = vmatprep.mubr.f32.mxu1 %v1647_v30 }
   0x2   :  { %v1686_v1 = vld [vmem:[%s2442_s1 + $0x10] sm:$0xff]  ;;  %v1698_v4 = vld [vmem:[%s2442_s1] sm:$0xff]  ;;  %v1708_v6 = vld [vmem:[%s2442_s1 + $0x18] sm:$0xff]  ;;  %v1804_v32 = vand.u32 127, %v39_v31 }
   0x3   :  { %v1357_v3 = vpack.i.bf16 %v1686_v1, %v1681_v0  ;;  %v1347_v7 = vpack.i.bf16 %v1698_v4, %v1691_v2  ;;  %v1715_v8 = vld [vmem:[%s2441_s0 + $0x8] sm:$0xff]  ;;  %v1362_v10 = vpack.i.bf16 %v1708_v6, %v1703_v5  ;;  %v1739_v14 = vld [vmem:[%s2442_s1 + $0x20] sm:$0xff]  ;;  %v1753_v18 = vld [vmem:[%s2442_s1 + $0x38] sm:$0xff] }
   0x4   :  { %v1720_v9 = vld [vmem:[%s2442_s1 + $0x8] sm:$0xff]  ;;  %v1744_v15 = vld [vmem:[%s2442_s1 + $0x40] sm:$0xff]  ;;  %v1758_v19 = vld [vmem:[%s2442_s1 + $0x58] sm:$0xff]  ;;  %v1807_v33 = vadd.s32 128, %v1804_v32  ;;  %v1810_v34 = vadd.s32 384, %v1804_v32  ;;  %v1813_v35 = vadd.s32 256, %v1804_v32  ;;  %v1296_v57 = vpack.c.bf16 %v1753_v18, %v1708_v6 }
   0x5   :  { %1358 = vrot.lane.b32.xlu1 %v1357_v3, %s1645_s9  ;;  %1348 = vrot.lane.b32.xlu0 %v1347_v7, %s1645_s9  ;;  %v1352_v11 = vpack.i.bf16 %v1720_v9, %v1715_v8  ;;  %v1729_v12 = vld [vmem:[%s2442_s1 + $0x28] sm:$0xff]  ;;  %v1367_v17 = vpack.i.bf16 %v1744_v15, %v1739_v14  ;;  %v1763_v20 = vld [vmem:[%s2442_s1 + $0x30] sm:$0xff]  ;;  %v1382_v22 = vpack.i.bf16 %v1758_v19, %v1753_v18  ;;  %v44_v38 = vand.u32 15, %v1804_v32 }
   0x6   :  { %v1734_v13 = vld [vmem:[%s2442_s1 + $0x48] sm:$0xff]  ;;  %v1768_v21 = vld [vmem:[%s2442_s1 + $0x50] sm:$0xff]  ;;  %v1782_v25 = vld [vmem:[%s2442_s1 + $0x78] sm:$0xff]  ;;  %v45_v36 = vand.u32 15, %v1807_v33  ;;  %v47_v37 = vand.u32 15, %v1810_v34  ;;  %v46_v40 = vand.u32 15, %v1813_v35  ;;  %v1268_v49 = vpack.c.bf16 %v1729_v12, %v1720_v9 }
   0x7   :  { %v1372_v16 = vpack.i.bf16 %v1734_v13, %v1729_v12  ;;  %v1377_v23 = vpack.i.bf16 %v1768_v21, %v1763_v20  ;;  %v1777_v24 = vld [vmem:[%s2442_s1 + $0x70] sm:$0xff]  ;;  %v1787_v26 = vld [vmem:[%s2442_s1 + $0x60] sm:$0xff]  ;;  %v1792_v27 = vld [vmem:[%s2442_s1 + $0x68] sm:$0xff]  ;;  %vm96_vm0 = vcmp.lt.s32.totalorder %v1804_v32, 1  ;;  %vm1834_vm3 = vcmp.eq.s32.totalorder %v44_v38, 0 }
   0x8   :  { %v1392_v28 = vpack.i.bf16 %v1782_v25, %v1777_v24  ;;  %v1387_v29 = vpack.i.bf16 %v1792_v27, %v1787_v26  ;;  %vm1822_vm1 = vcmp.eq.s32.totalorder %v45_v36, 0  ;;  %vm1828_vm2 = vcmp.eq.s32.totalorder %v47_v37, 0  ;;  %v236_v44 = vld [vmem:[%s2443_s2 + $0x10] sm:$0xff]  ;;  %v237_v33 = vld [vmem:[%s2443_s2 + $0x18] sm:$0xff] }
   0x9   :  { %1363 = vrot.lane.b32.xlu1 %v1362_v10, %s1645_s9  ;;  %1353 = vrot.lane.b32.xlu0 %v1352_v11, %s1645_s9  ;;  %vm1840_vm4 = vcmp.eq.s32.totalorder %v46_v40, 0  ;;  %v1270_v58 = vpack.c.bf16 %v1739_v14, %v1698_v4  ;;  %vm185_vm5 = vcmp.lt.s32.totalorder %v1804_v32, 127  ;;  %v1272_v42 = vpack.c.bf16 %v1792_v27, %v1734_v13 }
   0xa   :  { %vm1963_vm6 = vcmp.eq.s32.totalorder %v44_v38, 15  ;;  %vm1973_vm7 = vcmp.eq.s32.totalorder %v45_v36, 15  ;;  %vm1979_vm8 = vcmp.eq.s32.totalorder %v47_v37, 15  ;;  %vm1991_vm9 = vcmp.eq.s32.totalorder %v46_v40, 15  ;;  %v235_v38 = vld [vmem:[%s2443_s2 + $0x8] sm:$0xff] }
   0xd   :  { %1373 = vrot.lane.b32.xlu1 %v1372_v16, %s1645_s9  ;;  %1368 = vrot.lane.b32.xlu0 %v1367_v17, %s1645_s9 }
  0x11   :  { %1383 = vrot.lane.b32.xlu1 %v1382_v22, %s1645_s9  ;;  %1378 = vrot.lane.b32.xlu0 %v1377_v23, %s1645_s9 }
  0x15   :  { %1393 = vrot.lane.b32.xlu1 %v1392_v28, %s1645_s9  ;;  %1388 = vrot.lane.b32.xlu0 %v1387_v29, %s1645_s9 }
  0x19   :  { %1403 = vrot.lane.b32.xlu1 %v1352_v11, %s1646_s8  ;;  %1398 = vrot.lane.b32.xlu0 %v1347_v7, %s1646_s8 }
  0x1d   :  { %1413 = vrot.lane.b32.xlu1 %v1362_v10, %s1646_s8  ;;  %1408 = vrot.lane.b32.xlu0 %v1357_v3, %s1646_s8 }
  0x21   :  { %1423 = vrot.lane.b32.xlu1 %v1372_v16, %s1646_s8  ;;  %1418 = vrot.lane.b32.xlu0 %v1367_v17, %s1646_s8 }
  0x25   :  { %1433 = vrot.lane.b32.xlu1 %v1382_v22, %s1646_s8  ;;  %1428 = vrot.lane.b32.xlu0 %v1377_v23, %s1646_s8 }
  0x29   :  { %163 = vrot.lane.b32.xlu1 %v1792_v27, %s1646_s8  ;;  %153 = vrot.lane.b32.xlu0 %v1787_v26, %s1646_s8 }
  0x2d   :  { %183 = vrot.lane.b32.xlu1 %v1782_v25, %s1646_s8  ;;  %173 = vrot.lane.b32.xlu0 %v1777_v24, %s1646_s8 }
  0x77   :  { %v1359_v39 = vpop.permute.xlu1 %1358  ;;  %v1349_v41 = vpop.permute.xlu0 %1348 }
  0x78   :  { %v1361_v45 = vunpack.i.h.bf16 %v1359_v39  ;;  %v1360_v46 = vunpack.i.l.bf16 %v1359_v39  ;;  %v1351_v50 = vunpack.i.h.bf16 %v1349_v41  ;;  %v1350_v51 = vunpack.i.l.bf16 %v1349_v41 }
  0x7b   :  { %v1364_v47 = vpop.permute.xlu1 %1363  ;;  %v1354_v54 = vpop.permute.xlu0 %1353 }
  0x7c   :  { %v1366_v52 = vunpack.i.h.bf16 %v1364_v47  ;;  %v1365_v53 = vunpack.i.l.bf16 %v1364_v47  ;;  %v1356_v55 = vunpack.i.h.bf16 %v1354_v54  ;;  %v1355_v56 = vunpack.i.l.bf16 %v1354_v54 }
  0x7e   :  { %v97_v59 = vsel %vm96_vm0, %v1360_v46, %v1365_v53  ;;  %v98_v60 = vsel %vm96_vm0, %v1361_v45, %v1366_v52  ;;  %v112_v61 = vsel %vm96_vm0, %v1365_v53, %v1350_v51  ;;  %v113_v62 = vsel %vm96_vm0, %v1366_v52, %v1351_v50 }
  0x7f   :  { %v1374_v63 = vpop.permute.xlu1 %1373  ;;  %v107_v3 = vsel %vm96_vm0, %v1350_v51, %v1355_v56  ;;  %v108_v7 = vsel %vm96_vm0, %v1351_v50, %v1356_v55  ;;  %v128_v10 = vsel %vm1828_vm2, %v1703_v5, %v97_v59  ;;  %v132_v11 = vsel %vm1828_vm2, %v1708_v6, %v98_v60  ;;  %v1369_v22 = vpop.permute.xlu0 %1368 }
  0x80   :  { %v1376_v16 = vunpack.i.h.bf16 %v1374_v63  ;;  %v1375_v17 = vunpack.i.l.bf16 %v1374_v63  ;;  %v126_v23 = vsel %vm1822_vm1, %v1715_v8, %v107_v3  ;;  %v130_v28 = vsel %vm1822_vm1, %v1720_v9, %v108_v7 }
  0x81   :  { %v1371_v29 = vunpack.i.h.bf16 %v1369_v22  ;;  %v1370_v31 = vunpack.i.l.bf16 %v1369_v22  ;;  %v1256_v39 = vpack.c.bf16 %v130_v28, %v126_v23  ;;  %v1284_v41 = vpack.c.bf16 %v132_v11, %v128_v10 }
  0x82   :  { %v125_v47 = vsel %vm1834_vm3, %v1691_v2, %v112_v61  ;;  %v129_v50 = vsel %vm1834_vm3, %v1698_v4, %v113_v62  ;;  %v102_v51 = vsel %vm96_vm0, %v1355_v56, %v1360_v46  ;;  %v103_v52 = vsel %vm96_vm0, %v1356_v55, %v1361_v45 }
  0x83   :  { %v110_v53 = vsel %vm96_vm0, %v1371_v29, %v1376_v16  ;;  %v109_v54 = vsel %vm96_vm0, %v1370_v31, %v1375_v17  ;;  %1257 = vmatprep.subr.bf16.mxu0 %v1256_v39  ;;  %1285 = vmatprep.subr.bf16.mxu1 %v1284_v41  ;;  %v1384_v59 = vpop.permute.xlu1 %1383  ;;  %v1258_v60 = vpack.c.bf16 %v129_v50, %v125_v47  ;;  %v1379_v3 = vpop.permute.xlu0 %1378 }
  0x84   :  { %v1386_v61 = vunpack.i.h.bf16 %v1384_v59  ;;  %v1385_v63 = vunpack.i.l.bf16 %v1384_v59  ;;  %v127_v46 = vsel %vm1840_vm4, %v1681_v0, %v102_v51  ;;  %v131_v45 = vsel %vm1840_vm4, %v1686_v1, %v103_v52 }
  0x85   :  { %v1381_v55 = vunpack.i.h.bf16 %v1379_v3  ;;  %v1380_v56 = vunpack.i.l.bf16 %v1379_v3  ;;  %1259 = vmatpush1.bf16.msra.mxu0 %v1258_v60  ;;  %v1286_v62 = vpack.c.bf16 %v131_v45, %v127_v46  ;;  %v134_v7 = vsel %vm1822_vm1, %v1729_v12, %v109_v54 }
  0x86   :  { %v114_v10 = vsel %vm96_vm0, %v1385_v63, %v1370_v31  ;;  %v115_v11 = vsel %vm96_vm0, %v1386_v61, %v1371_v29  ;;  %v138_v22 = vsel %vm1822_vm1, %v1734_v13, %v110_v53  ;;  %v1298_v23 = vpack.c.bf16 %v1763_v20, %v1686_v1 }
  0x87   :  { %v100_v28 = vsel %vm96_vm0, %v1381_v55, %v1386_v61  ;;  %v105_v39 = vsel %vm96_vm0, %v1376_v16, %v1381_v55  ;;  %v99_v41 = vsel %vm96_vm0, %v1380_v56, %v1385_v63  ;;  %v104_v31 = vsel %vm96_vm0, %v1375_v17, %v1380_v56  ;;  %1287 = vmatpush1.bf16.msra.mxu1 %v1286_v62  ;;  %v1394_v29 = vpop.permute.xlu1 %1393  ;;  %v1389_v52 = vpop.permute.xlu0 %1388 }
  0x88   :  { %v1260_v47 = vpack.c.bf16 %v138_v22, %v134_v7  ;;  %v1396_v50 = vunpack.i.h.bf16 %v1394_v29  ;;  %v1395_v51 = vunpack.i.l.bf16 %v1394_v29  ;;  %v133_v53 = vsel %vm1834_vm3, %v1739_v14, %v114_v10 }
  0x89   :  { %v1391_v54 = vunpack.i.h.bf16 %v1389_v52  ;;  %v1390_v59 = vunpack.i.l.bf16 %v1389_v52  ;;  %v137_v16 = vsel %vm1834_vm3, %v1744_v15, %v115_v11  ;;  %v136_v17 = vsel %vm1828_vm2, %v1753_v18, %v99_v41 }
  0x8a   :  { %1261 = vmatprep.subr.bf16.mxu0 %v1260_v47  ;;  %v101_v60 = vsel %vm96_vm0, %v1395_v51, %v1396_v50  ;;  %v1262_v61 = vpack.c.bf16 %v137_v16, %v133_v53  ;;  %v140_v63 = vsel %vm1828_vm2, %v1758_v19, %v100_v28  ;;  %v135_v3 = vsel %vm1840_vm4, %v1763_v20, %v104_v31 }
  0x8b   :  { %v106_v46 = vsel %vm96_vm0, %v1391_v54, %v1395_v51  ;;  %v111_v45 = vsel %vm96_vm0, %v1390_v59, %v1391_v54  ;;  %v116_v55 = vsel %vm96_vm0, %v1396_v50, %v1390_v59  ;;  %v1288_v56 = vpack.c.bf16 %v140_v63, %v136_v17  ;;  %v1404_v62 = vpop.permute.xlu1 %1403  ;;  %v1399_v11 = vpop.permute.xlu0 %1398 }
  0x8c   :  { %1263 = vmatpush1.bf16.msra.mxu0 %v1262_v61  ;;  %v1406_v7 = vunpack.i.h.bf16 %v1404_v62  ;;  %v1405_v10 = vunpack.i.l.bf16 %v1404_v62  ;;  %v139_v22 = vsel %vm1840_vm4, %v1768_v21, %v105_v39  ;;  %v142_v28 = vsel %vm1822_vm1, %v1792_v27, %v111_v45 }
  0x8d   :  { %1289 = vmatprep.subr.bf16.mxu1 %v1288_v56  ;;  %v1401_v41 = vunpack.i.h.bf16 %v1399_v11  ;;  %v1400_v31 = vunpack.i.l.bf16 %v1399_v11  ;;  %v1290_v29 = vpack.c.bf16 %v139_v22, %v135_v3  ;;  %v1264_v47 = vpack.c.bf16 %v1715_v8, %v142_v28 }
  0x8e   :  { %v144_v50 = vsel %vm1828_vm2, %v1782_v25, %v101_v60  ;;  %v141_v51 = vsel %vm1834_vm3, %v1787_v26, %v116_v55  ;;  %v143_v39 = vsel %vm1840_vm4, %v1777_v24, %v106_v46  ;;  %v1300_v3 = vpack.c.bf16 %v1782_v25, %v1758_v19  ;;  %v234_v46 = vld [vmem:[%s2443_s2] sm:$0xff] }
  0x8f   :  { %v197_v52 = vsel %vm185_vm5, %v1401_v41, %v1406_v7  ;;  %v196_v53 = vsel %vm185_vm5, %v1400_v31, %v1405_v10  ;;  %1291 = vmatpush1.bf16.msra.mxu1 %v1290_v29  ;;  %1265 = vmatprep.subr.bf16.mxu0 %v1264_v47  ;;  %v1292_v43 = vpack.c.bf16 %v1703_v5, %v144_v50  ;;  %v1414_v54 = vpop.permute.xlu1 %1413  ;;  %v1409_v16 = vpop.permute.xlu0 %1408 }
  0x90   :  { %v1416_v48 = vunpack.i.h.bf16 %v1414_v54  ;;  %v1415_v59 = vunpack.i.l.bf16 %v1414_v54  ;;  %v1266_v17 = vpack.c.bf16 %v1691_v2, %v141_v51  ;;  %v1294_v60 = vpack.c.bf16 %v1681_v0, %v143_v39 }
  0x91   :  { %1293 = vmatprep.subr.bf16.mxu1 %v1292_v43  ;;  %v1411_v61 = vunpack.i.h.bf16 %v1409_v16  ;;  %v1410_v63 = vunpack.i.l.bf16 %v1409_v16  ;;  %v214_v45 = vsel %vm1963_vm6, %v1691_v2, %v196_v53  ;;  %v218_v55 = vsel %vm1963_vm6, %v1698_v4, %v197_v52 }
  0x92   :  { %1267 = vmatpush1.bf16.msra.mxu0 %v1266_v17  ;;  %v201_v34 = vsel %vm185_vm5, %v1415_v59, %v1400_v31  ;;  %v202_v36 = vsel %vm185_vm5, %v1416_v48, %v1401_v41  ;;  %v1278_v53 = vpack.c.bf16 %v218_v55, %v214_v45 }
  0x93   :  { %v192_v37 = vsel %vm185_vm5, %v1406_v7, %v1411_v61  ;;  %v191_v2 = vsel %vm185_vm5, %v1405_v10, %v1410_v63  ;;  %1295 = vmatpush1.bf16.msra.mxu1 %v1294_v60  ;;  %v1424_v56 = vpop.permute.xlu1 %1423  ;;  %v187_v35 = vsel %vm185_vm5, %v1411_v61, %v1416_v48  ;;  %v186_v40 = vsel %vm185_vm5, %v1410_v63, %v1415_v59  ;;  %v1419_v11 = vpop.permute.xlu0 %1418 }
  0x94   :  { %1269 = vmatprep.subr.bf16.mxu0 %v1268_v49  ;;  %1297 = vmatprep.subr.bf16.mxu1 %v1296_v57  ;;  %v1426_v62 = vunpack.i.h.bf16 %v1424_v56  ;;  %v1425_v7 = vunpack.i.l.bf16 %v1424_v56  ;;  %v1421_v10 = vunpack.i.h.bf16 %v1419_v11  ;;  %v1420_v22 = vunpack.i.l.bf16 %v1419_v11 }
  0x95   :  { %v215_v28 = vsel %vm1973_vm7, %v1715_v8, %v191_v2  ;;  %v219_v41 = vsel %vm1973_vm7, %v1720_v9, %v192_v37  ;;  %v1274_v49 = vpack.c.bf16 %v1787_v26, %v1744_v15  ;;  %v1302_v57 = vpack.c.bf16 %v1777_v24, %v1768_v21 }
  0x96   :  { %1271 = vmatpush1.bf16.msra.mxu0 %v1270_v58  ;;  %v217_v31 = vsel %vm1979_vm8, %v1703_v5, %v201_v34  ;;  %v221_v8 = vsel %vm1979_vm8, %v1708_v6, %v202_v36  ;;  %v198_v29 = vsel %vm185_vm5, %v1420_v22, %v1425_v7  ;;  %v216_v47 = vsel %vm1991_vm9, %v1681_v0, %v186_v40 }
  0x97   :  { %1299 = vmatpush1.bf16.msra.mxu1 %v1298_v23  ;;  %1273 = vmatprep.subr.bf16.mxu0 %v1272_v42  ;;  %v1434_v58 = vpop.permute.xlu1 %1433  ;;  %v220_v5 = vsel %vm1991_vm9, %v1686_v1, %v187_v35  ;;  %v1429_v39 = vpop.permute.xlu0 %1428  ;;  %v1276_v52 = vpack.c.bf16 %v219_v41, %v215_v28  ;;  %v199_v43 = vsel %vm185_vm5, %v1421_v10, %v1426_v62 }
  0x98   :  { %1301 = vmatprep.subr.bf16.mxu1 %v1300_v3  ;;  %v1436_v50 = vunpack.i.h.bf16 %v1434_v58  ;;  %v1435_v51 = vunpack.i.l.bf16 %v1434_v58  ;;  %v1431_v23 = vunpack.i.h.bf16 %v1429_v39  ;;  %v1430_v42 = vunpack.i.l.bf16 %v1429_v39  ;;  %v238_v58 = vld [vmem:[%s2443_s2 + $0x20] sm:$0xff]  ;;  %v243_v39 = vld [vmem:[%s2443_s2 + $0x48] sm:$0xff] }
  0x99   :  { %v1304_v54 = vpack.c.bf16 %v221_v8, %v217_v31  ;;  %v1306_v59 = vpack.c.bf16 %v220_v5, %v216_v47  ;;  %v222_v16 = vsel %vm1963_vm6, %v1739_v14, %v198_v29  ;;  %v226_v56 = vsel %vm1963_vm6, %v1744_v15, %v199_v43  ;;  %v239_v47 = vld [vmem:[%s2443_s2 + $0x28] sm:$0xff]  ;;  %v240_v5 = vld [vmem:[%s2443_s2 + $0x30] sm:$0xff] }
  0x9a   :  { %v203_v48 = vsel %vm185_vm5, %v1435_v51, %v1420_v22  ;;  %v204_v0 = vsel %vm185_vm5, %v1436_v50, %v1421_v10  ;;  %1275 = vmatpush1.bf16.msra.mxu0 %v1274_v49  ;;  %v189_v17 = vsel %vm185_vm5, %v1431_v23, %v1436_v50  ;;  %v194_v60 = vsel %vm185_vm5, %v1426_v62, %v1431_v23  ;;  %v241_v50 = vld [vmem:[%s2443_s2 + $0x38] sm:$0xff] }
  0x9b   :  { %v188_v61 = vsel %vm185_vm5, %v1430_v42, %v1435_v51  ;;  %v193_v63 = vsel %vm185_vm5, %v1425_v7, %v1430_v42  ;;  %1303 = vmatpush1.bf16.msra.mxu1 %v1302_v57  ;;  %v164_v3 = vpop.permute.xlu1 %163  ;;  %1277 = vmatprep.subr.bf16.mxu0 %v1276_v52  ;;  %v154_v45 = vpop.permute.xlu0 %153  ;;  %v227_v34 = vsel %vm1973_vm7, %v1734_v13, %v194_v60  ;;  %v242_v51 = vld [vmem:[%s2443_s2 + $0x40] sm:$0xff]  ;;  %v244_v52 = vld [vmem:[%s2443_s2 + $0x50] sm:$0xff] }
  0x9c   :  { %1305 = vmatprep.subr.bf16.mxu1 %v1304_v54  ;;  %v223_v55 = vsel %vm1973_vm7, %v1729_v12, %v193_v63  ;;  %v225_v36 = vsel %vm1979_vm8, %v1753_v18, %v203_v48  ;;  %v229_v2 = vsel %vm1979_vm8, %v1758_v19, %v204_v0  ;;  %v224_v35 = vsel %vm1991_vm9, %v1763_v20, %v188_v61 }
  0x9d   :  { %v1280_v37 = vpack.c.bf16 %v227_v34, %v223_v55  ;;  %v1308_v40 = vpack.c.bf16 %v229_v2, %v225_v36  ;;  %v228_v62 = vsel %vm1991_vm9, %v1768_v21, %v189_v17  ;;  %v1282_v28 = vpack.c.bf16 %v226_v56, %v222_v16 }
  0x9e   :  { %1279 = vmatpush1.bf16.msra.mxu0 %v1278_v53  ;;  %v1310_v11 = vpack.c.bf16 %v228_v62, %v224_v35  ;;  %v200_v31 = vsel %vm185_vm5, %v154_v45, %v164_v3  ;;  %v245_v53 = vld [vmem:[%s2443_s2 + $0x58] sm:$0xff] }
  0x9f   :  { %1307 = vmatpush1.bf16.msra.mxu1 %v1306_v59  ;;  %1281 = vmatprep.subr.bf16.mxu0 %v1280_v37  ;;  %v184_v7 = vpop.permute.xlu1 %183  ;;  %v174_v22 = vpop.permute.xlu0 %173  ;;  %v230_v32 = vsel %vm1963_vm6, %v1787_v26, %v200_v31 }
  0xa0   :  { %1309 = vmatprep.subr.bf16.mxu1 %v1308_v40  ;;  %v205_v10 = vsel %vm185_vm5, %v184_v7, %v154_v45  ;;  %v190_v41 = vsel %vm185_vm5, %v174_v22, %v184_v7  ;;  %v195_v49 = vsel %vm185_vm5, %v164_v3, %v174_v22 }
  0xa1   :  { %v233_v57 = vsel %vm1979_vm8, %v1782_v25, %v205_v10  ;;  %v231_v8 = vsel %vm1973_vm7, %v1792_v27, %v195_v49  ;;  %v232_v29 = vsel %vm1991_vm9, %v1777_v24, %v190_v41 }
  0xa2   :  { %1283 = vmatpush1.bf16.msra.mxu0 %v1282_v28 }
  0xa3   :  { %1311 = vmatpush1.bf16.msra.mxu1 %v1310_v11  ;;  %311 = vmatprep.subr.mxu0 %v231_v8 }
  0xa4   :  { %448 = vmatprep.subr.mxu1 %v233_v57 }
  0xa6   :  { %312 = vmatpush1.msra.mxu0 %v230_v32 }
  0xa7   :  { %449 = vmatpush1.msra.mxu1 %v232_v29  ;;  %1176 = vmatmul.mubr.msk.f32.vlgmr.msra.gmra.mrb[0].mxu0 %vm246_vm10, %v234_v46 }
  0xa8   :  { %1188 = vmatmul.mubr.msk.f32.vlgmr.msra.gmra.mrb[0].mxu1 %vm246_vm10, %v234_v46  ;;  %353 = vmatprep.mubr.f32.mxu0 %v1647_v30 }
  0xa9   :  { %490 = vmatprep.mubr.f32.mxu1 %v1647_v30 }
  0xab   :  { %1177 = vmatmul.mubr.msk.f32.gmra.mrb[2].mxu0 %vm246_vm10, %v235_v38 }
  0xac   :  { %1189 = vmatmul.mubr.msk.f32.gmra.mrb[2].mxu1 %vm246_vm10, %v235_v38  ;;  %359 = vmatprep.mubr.f32.mxu0 %v1647_v30 }
  0xad   :  { %496 = vmatprep.mubr.f32.mxu1 %v1647_v30 }
  0xaf   :  { %1178 = vmatmul.mubr.msk.f32.gmra.mrb[4].mxu0 %vm246_vm10, %v236_v44 }
  0xb0   :  { %1190 = vmatmul.mubr.msk.f32.gmra.mrb[4].mxu1 %vm246_vm10, %v236_v44  ;;  %365 = vmatprep.mubr.f32.mxu0 %v1647_v30 }
  0xb1   :  { %502 = vmatprep.mubr.f32.mxu1 %v1647_v30 }
  0xb3   :  { %1179 = vmatmul.mubr.msk.f32.gmra.mrb[6].mxu0 %vm246_vm10, %v237_v33 }
  0xb4   :  { %1191 = vmatmul.mubr.msk.f32.gmra.mrb[6].mxu1 %vm246_vm10, %v237_v33  ;;  %371 = vmatprep.mubr.f32.mxu0 %v1647_v30 }
  0xb5   :  { %508 = vmatprep.mubr.f32.mxu1 %v1647_v30 }
  0xb7   :  { %1180 = vmatmul.mubr.msk.f32.gmra.mrb[8].mxu0 %vm246_vm10, %v238_v58 }
  0xb8   :  { %1192 = vmatmul.mubr.msk.f32.gmra.mrb[8].mxu1 %vm246_vm10, %v238_v58  ;;  %377 = vmatprep.mubr.f32.mxu0 %v1647_v30 }
  0xb9   :  { %514 = vmatprep.mubr.f32.mxu1 %v1647_v30 }
  0xbb   :  { %1181 = vmatmul.mubr.msk.f32.gmra.mrb[10].mxu0 %vm246_vm10, %v239_v47 }
  0xbc   :  { %1193 = vmatmul.mubr.msk.f32.gmra.mrb[10].mxu1 %vm246_vm10, %v239_v47  ;;  %383 = vmatprep.mubr.f32.mxu0 %v1647_v30 }
  0xbd   :  { %520 = vmatprep.mubr.f32.mxu1 %v1647_v30 }
  0xbf   :  { %1182 = vmatmul.mubr.msk.f32.gmra.mrb[12].mxu0 %vm246_vm10, %v240_v5 }
  0xc0   :  { %1194 = vmatmul.mubr.msk.f32.gmra.mrb[12].mxu1 %vm246_vm10, %v240_v5  ;;  %389 = vmatprep.mubr.f32.mxu0 %v1647_v30 }
  0xc1   :  { %526 = vmatprep.mubr.f32.mxu1 %v1647_v30 }
  0xc3   :  { %1183 = vmatmul.mubr.msk.f32.gmra.mrb[14].mxu0 %vm246_vm10, %v241_v50 }
  0xc4   :  { %1195 = vmatmul.mubr.msk.f32.gmra.mrb[14].mxu1 %vm246_vm10, %v241_v50  ;;  %395 = vmatprep.mubr.f32.mxu0 %v1647_v30 }
  0xc5   :  { %532 = vmatprep.mubr.f32.mxu1 %v1647_v30 }
  0xc7   :  { %1184 = vmatmul.mubr.msk.f32.gmra.mrb[16].mxu0 %vm246_vm10, %v242_v51 }
  0xc8   :  { %1196 = vmatmul.mubr.msk.f32.gmra.mrb[16].mxu1 %vm246_vm10, %v242_v51  ;;  %401 = vmatprep.mubr.f32.mxu0 %v1647_v30 }
  0xc9   :  { %538 = vmatprep.mubr.f32.mxu1 %v1647_v30 }
  0xcb   :  { %1185 = vmatmul.mubr.msk.f32.gmra.mrb[18].mxu0 %vm246_vm10, %v243_v39 }
  0xcc   :  { %1197 = vmatmul.mubr.msk.f32.gmra.mrb[18].mxu1 %vm246_vm10, %v243_v39  ;;  %407 = vmatprep.mubr.f32.mxu0 %v1647_v30 }
  0xcd   :  { %544 = vmatprep.mubr.f32.mxu1 %v1647_v30 }
  0xcf   :  { %1186 = vmatmul.mubr.msk.f32.gmra.mrb[20].mxu0 %vm246_vm10, %v244_v52 }
  0xd0   :  { %1198 = vmatmul.mubr.msk.f32.gmra.mrb[20].mxu1 %vm246_vm10, %v244_v52  ;;  %413 = vmatprep.mubr.f32.mxu0 %v1647_v30 }
  0xd1   :  { %550 = vmatprep.mubr.f32.mxu1 %v1647_v30 }
  0xd3   :  { %1187 = vmatmul.mubr.msk.f32.gmra.mrb[22].mxu0 %vm246_vm10, %v245_v53 }
  0xd4   :  { %1199 = vmatmul.mubr.msk.f32.gmra.mrb[22].mxu1 %vm246_vm10, %v245_v53  ;;  %846 = vmatprep.mubr.f32.mxu0 %v1647_v30 }
  0xd5   :  { %935 = vmatprep.mubr.f32.mxu1 %v1647_v30 }
 0x17a   :  { %v349_v43 = vpop.f32.mrb[0].mxu0 }
 0x17b   :  { %v1200_v23 = vmul.f32 -1.442695, %v349_v43  ;;  %v486_v42 = vpop.f32.mrb[0].mxu1  ;;  %v351_v54 = vpop.f32.mrb[1].mxu0 }
 0x17c   :  { %v1202_v48 = vmul.f32 -1.442695, %v486_v42  ;;  %v1201_v0 = vmul.f32 -1.442695, %v351_v54  ;;  %v488_v59 = vpop.f32.mrb[1].mxu1 }
 0x17d   :  { %1437 = vpow2.f32 %v1200_v23  ;;  %v1203_v16 = vmul.f32 -1.442695, %v488_v59 }
 0x17e   :  { %1439 = vpow2.f32 %v1202_v48  ;;  %v355_v17 = vpop.f32.mrb[2].mxu0 }
 0x17f   :  { %1441 = vpow2.f32 %v1201_v0  ;;  %v1204_v60 = vmul.f32 -1.442695, %v355_v17  ;;  %v492_v61 = vpop.f32.mrb[2].mxu1  ;;  %v357_v63 = vpop.f32.mrb[3].mxu0 }
 0x180   :  { %1443 = vpow2.f32 %v1203_v16  ;;  %v1206_v3 = vmul.f32 -1.442695, %v492_v61  ;;  %v1205_v45 = vmul.f32 -1.442695, %v357_v63  ;;  %v494_v55 = vpop.f32.mrb[3].mxu1 }
 0x181   :  { %1445 = vpow2.f32 %v1204_v60  ;;  %v1207_v34 = vmul.f32 -1.442695, %v494_v55 }
 0x182   :  { %1447 = vpow2.f32 %v1206_v3  ;;  %v361_v36 = vpop.f32.mrb[4].mxu0 }
 0x183   :  { %1449 = vpow2.f32 %v1205_v45  ;;  %v1208_v37 = vmul.f32 -1.442695, %v361_v36  ;;  %v498_v2 = vpop.f32.mrb[4].mxu1  ;;  %v363_v56 = vpop.f32.mrb[5].mxu0 }
 0x184   :  { %1451 = vpow2.f32 %v1207_v34  ;;  %v1210_v35 = vmul.f32 -1.442695, %v498_v2  ;;  %v1209_v40 = vmul.f32 -1.442695, %v363_v56  ;;  %v500_v62 = vpop.f32.mrb[5].mxu1 }
 0x185   :  { %1453 = vpow2.f32 %v1208_v37  ;;  %v1211_v51 = vmul.f32 -1.442695, %v500_v62 }
 0x186   :  { %v367_v7 = vpop.f32.mrb[6].mxu0  ;;  %1455 = vpow2.f32 %v1210_v35 }
 0x187   :  { %v1438_v11 = vpop.eup %1437  ;;  %v1212_v10 = vmul.f32 -1.442695, %v367_v7  ;;  %v504_v22 = vpop.f32.mrb[6].mxu1  ;;  %1457 = vpow2.f32 %v1209_v40 }
 0x188   :  { %v369_v28 = vpop.f32.mrb[7].mxu0  ;;  %v1440_v41 = vpop.eup %1439  ;;  %v605_v49 = vadd.f32 1.0, %v1438_v11  ;;  %v1214_v54 = vmul.f32 -1.442695, %v504_v22 }
 0x189   :  { %v506_v57 = vpop.f32.mrb[7].mxu1  ;;  %v1442_v31 = vpop.eup %1441  ;;  %v607_v8 = vadd.f32 1.0, %v1440_v41  ;;  %1459 = vpow2.f32 %v1212_v10  ;;  %v1213_v59 = vmul.f32 -1.442695, %v369_v28 }
 0x18a   :  { %v1444_v29 = vpop.eup %1443  ;;  %1461 = vrcp.f32 %v605_v49  ;;  %v606_v46 = vadd.f32 1.0, %v1442_v31  ;;  %v1215_v17 = vmul.f32 -1.442695, %v506_v57 }
 0x18b   :  { %v1446_v32 = vpop.eup %1445  ;;  %1463 = vrcp.f32 %v607_v8  ;;  %v608_v38 = vadd.f32 1.0, %v1444_v29 }
 0x18c   :  { %v1448_v44 = vpop.eup %1447  ;;  %1465 = vrcp.f32 %v606_v46  ;;  %v609_v33 = vadd.f32 1.0, %v1446_v32 }
 0x18d   :  { %v1450_v58 = vpop.eup %1449  ;;  %1467 = vrcp.f32 %v608_v38  ;;  %v611_v47 = vadd.f32 1.0, %v1448_v44 }
 0x18e   :  { %v1452_v5 = vpop.eup %1451  ;;  %1469 = vrcp.f32 %v609_v33  ;;  %v610_v50 = vadd.f32 1.0, %v1450_v58 }
 0x18f   :  { %v1454_v39 = vpop.eup %1453  ;;  %1471 = vrcp.f32 %v611_v47  ;;  %v612_v52 = vadd.f32 1.0, %v1452_v5 }
 0x190   :  { %1473 = vrcp.f32 %v610_v50  ;;  %v613_v53 = vadd.f32 1.0, %v1454_v39  ;;  %v1456_v43 = vpop.eup %1455 }
 0x191   :  { %1475 = vrcp.f32 %v612_v52  ;;  %v1458_v23 = vpop.eup %1457 }
 0x192   :  { %1477 = vpow2.f32 %v1211_v51  ;;  %v614_v28 = vadd.f32 1.0, %v1458_v23 }
 0x193   :  { %v1460_v42 = vpop.eup %1459  ;;  %1479 = vrcp.f32 %v613_v53 }
 0x194   :  { %v1462_v48 = vpop.eup %1461  ;;  %v617_v0 = vadd.f32 1.0, %v1460_v42 }
 0x195   :  { %v1464_v16 = vpop.eup %1463  ;;  %v749_v45 = vmul.f32 %v1462_v48, %v1698_v4  ;;  %v615_v4 = vadd.f32 1.0, %v1456_v43 }
 0x196   :  { %v1466_v60 = vpop.eup %1465  ;;  %1481 = vrcp.f32 %v617_v0  ;;  %v751_v36 = vmul.f32 %v1464_v16, %v1686_v1 }
 0x197   :  { %v1468_v61 = vpop.eup %1467  ;;  %1483 = vpow2.f32 %v1214_v54  ;;  %v750_v56 = vmul.f32 %v1466_v60, %v1720_v9 }
 0x198   :  { %v1470_v63 = vpop.eup %1469  ;;  %1485 = vpow2.f32 %v1213_v59  ;;  %v752_v7 = vmul.f32 %v1468_v61, %v1708_v6 }
 0x199   :  { %v1472_v3 = vpop.eup %1471  ;;  %1487 = vpow2.f32 %v1215_v17  ;;  %v753_v55 = vmul.f32 %v1470_v63, %v1739_v14 }
 0x19a   :  { %v1474_v34 = vpop.eup %1473  ;;  %v755_v37 = vmul.f32 %v1472_v3, %v1763_v20  ;;  %1489 = vrcp.f32 %v615_v4 }
 0x19b   :  { %v1476_v2 = vpop.eup %1475  ;;  %v754_v35 = vmul.f32 %v1474_v34, %v1729_v12  ;;  %v1314_v40 = vpack.c.bf16 %v753_v55, %v749_v45  ;;  %1491 = vrcp.f32 %v614_v28 }
 0x19c   :  { %v1478_v62 = vpop.eup %1477  ;;  %v756_v11 = vmul.f32 %v1476_v2, %v1753_v18  ;;  %v1322_v10 = vpack.c.bf16 %v755_v37, %v751_v36 }
 0x19d   :  { %v1312_v22 = vpack.c.bf16 %v754_v35, %v750_v56  ;;  %v1480_v14 = vpop.eup %1479  ;;  %v616_v1 = vadd.f32 1.0, %v1478_v62 }
 0x19e   :  { %v1320_v41 = vpack.c.bf16 %v756_v11, %v752_v7  ;;  %v757_v12 = vmul.f32 %v1480_v14, %v1744_v15 }
 0x19f   :  { %1313 = vmatprep.subr.bf16.mxu0 %v1312_v22  ;;  %1493 = vrcp.f32 %v616_v1 }
 0x1a0   :  { %v1482_v20 = vpop.eup %1481  ;;  %1321 = vmatprep.subr.bf16.mxu1 %v1320_v41  ;;  %1315 = vmatpush1.bf16.msra.mxu0 %v1314_v40 }
 0x1a1   :  { %v1484_v9 = vpop.eup %1483  ;;  %1323 = vmatpush1.bf16.msra.mxu1 %v1322_v10  ;;  %v761_v6 = vmul.f32 %v1482_v20, %v1787_v26 }
 0x1a2   :  { %v1486_v49 = vpop.eup %1485  ;;  %v619_v18 = vadd.f32 1.0, %v1484_v9 }
 0x1a3   :  { %v1488_v57 = vpop.eup %1487  ;;  %v618_v31 = vadd.f32 1.0, %v1486_v49  ;;  %v1318_v8 = vpack.c.bf16 %v761_v6, %v757_v12 }
 0x1a4   :  { %1495 = vrcp.f32 %v619_v18  ;;  %v620_v29 = vadd.f32 1.0, %v1488_v57  ;;  %v1490_v46 = vpop.eup %1489 }
 0x1a5   :  { %1497 = vrcp.f32 %v618_v31  ;;  %v1492_v32 = vpop.eup %1491  ;;  %v759_v15 = vmul.f32 %v1490_v46, %v1768_v21  ;;  %v765_v21 = vld [vmem:[%s2444_s3] sm:$0xff] }
 0x1a6   :  { %1499 = vrcp.f32 %v620_v29  ;;  %v758_v47 = vmul.f32 %v1492_v32, %v1734_v13  ;;  %v766_v13 = vld [vmem:[%s2444_s3 + $0x8] sm:$0xff] }
 0x1a9   :  { %v1494_v38 = vpop.eup %1493 }
 0x1aa   :  { %v760_v50 = vmul.f32 %v1494_v38, %v1758_v19  ;;  %v767_v19 = vld [vmem:[%s2444_s3 + $0x10] sm:$0xff] }
 0x1ae   :  { %v1496_v44 = vpop.eup %1495 }
 0x1af   :  { %v1498_v33 = vpop.eup %1497  ;;  %v763_v26 = vmul.f32 %v1496_v44, %v1777_v24  ;;  %v768_v24 = vld [vmem:[%s2444_s3 + $0x18] sm:$0xff] }
 0x1b0   :  { %v1500_v58 = vpop.eup %1499  ;;  %v762_v5 = vmul.f32 %v1498_v33, %v1792_v27  ;;  %v510_v27 = vpop.f32.mrb[8].mxu1 }
 0x1b1   :  { %v764_v51 = vmul.f32 %v1500_v58, %v1782_v25  ;;  %v1326_v39 = vpack.c.bf16 %v763_v26, %v759_v15  ;;  %v373_v25 = vpop.f32.mrb[8].mxu0  ;;  %v512_v23 = vpop.f32.mrb[9].mxu1  ;;  %v1218_v55 = vmul.f32 -1.442695, %v510_v27 }
 0x1b2   :  { %v1316_v52 = vpack.c.bf16 %v762_v5, %v758_v47  ;;  %v375_v43 = vpop.f32.mrb[9].mxu0  ;;  %v516_v54 = vpop.f32.mrb[10].mxu1  ;;  %v1216_v45 = vmul.f32 -1.442695, %v373_v25  ;;  %v1219_v36 = vmul.f32 -1.442695, %v512_v23 }
 0x1b3   :  { %v1324_v53 = vpack.c.bf16 %v764_v51, %v760_v50  ;;  %v379_v42 = vpop.f32.mrb[10].mxu0  ;;  %v518_v0 = vpop.f32.mrb[11].mxu1  ;;  %v1217_v34 = vmul.f32 -1.442695, %v375_v43  ;;  %v1222_v2 = vmul.f32 -1.442695, %v516_v54 }
 0x1b4   :  { %1317 = vmatprep.subr.bf16.mxu0 %v1316_v52  ;;  %v381_v48 = vpop.f32.mrb[11].mxu0  ;;  %v522_v16 = vpop.f32.mrb[12].mxu1  ;;  %1501 = vpow2.f32 %v1216_v45  ;;  %v1220_v37 = vmul.f32 -1.442695, %v379_v42  ;;  %v1223_v35 = vmul.f32 -1.442695, %v518_v0 }
 0x1b5   :  { %1325 = vmatprep.subr.bf16.mxu1 %v1324_v53  ;;  %1319 = vmatpush1.bf16.msra.mxu0 %v1318_v8  ;;  %v385_v59 = vpop.f32.mrb[12].mxu0  ;;  %v524_v60 = vpop.f32.mrb[13].mxu1  ;;  %1503 = vpow2.f32 %v1218_v55  ;;  %v1221_v56 = vmul.f32 -1.442695, %v381_v48  ;;  %v1226_v62 = vmul.f32 -1.442695, %v522_v16 }
 0x1b6   :  { %1327 = vmatpush1.bf16.msra.mxu1 %v1326_v39  ;;  %v387_v17 = vpop.f32.mrb[13].mxu0  ;;  %v2227_v63 = vpop.f32.mrb[14].mxu1  ;;  %1505 = vpow2.f32 %v1217_v34  ;;  %v1224_v40 = vmul.f32 -1.442695, %v385_v59  ;;  %v1227_v11 = vmul.f32 -1.442695, %v524_v60 }
 0x1b7   :  { %v391_v61 = vpop.f32.mrb[14].mxu0  ;;  %v2231_v3 = vpop.f32.mrb[15].mxu1  ;;  %1507 = vpow2.f32 %v1219_v36  ;;  %v1225_v7 = vmul.f32 -1.442695, %v387_v17  ;;  %v1230_v50 = vmul.f32 -1.442695, %v2227_v63 }
 0x1b8   :  { %1232 = vmatmul.mubr.msk.f32.vlgmr.msra.gmra.mrb[16].mxu0 %vm769_vm11, %v765_v21  ;;  %1509 = vpow2.f32 %v1220_v37  ;;  %v1228_v10 = vmul.f32 -1.442695, %v391_v61  ;;  %v1231_v53 = vmul.f32 -1.442695, %v2231_v3 }
 0x1b9   :  { %1236 = vmatmul.mubr.msk.f32.vlgmr.msra.gmra.mrb[16].mxu1 %vm769_vm11, %v765_v21  ;;  %852 = vmatprep.mubr.f32.mxu0 %v1647_v30  ;;  %1511 = vpow2.f32 %v1222_v2 }
 0x1ba   :  { %941 = vmatprep.mubr.f32.mxu1 %v1647_v30  ;;  %1513 = vpow2.f32 %v1221_v56 }
 0x1bb   :  { %1515 = vpow2.f32 %v1223_v35 }
 0x1bc   :  { %1233 = vmatmul.mubr.msk.f32.gmra.mrb[18].mxu0 %vm769_vm11, %v766_v13  ;;  %1517 = vpow2.f32 %v1224_v40 }
 0x1bd   :  { %1237 = vmatmul.mubr.msk.f32.gmra.mrb[18].mxu1 %vm769_vm11, %v766_v13  ;;  %858 = vmatprep.mubr.f32.mxu0 %v1647_v30  ;;  %1519 = vpow2.f32 %v1226_v62 }
 0x1be   :  { %947 = vmatprep.mubr.f32.mxu1 %v1647_v30  ;;  %v1502_v4 = vpop.eup %1501  ;;  %1521 = vpow2.f32 %v1225_v7 }
 0x1bf   :  { %v1504_v22 = vpop.eup %1503  ;;  %1523 = vpow2.f32 %v1227_v11  ;;  %v701_v41 = vadd.f32 1.0, %v1502_v4 }
 0x1c0   :  { %1234 = vmatmul.mubr.msk.f32.gmra.mrb[20].mxu0 %vm769_vm11, %v767_v19  ;;  %v1506_v14 = vpop.eup %1505  ;;  %1525 = vpow2.f32 %v1228_v10  ;;  %v703_v20 = vadd.f32 1.0, %v1504_v22 }
 0x1c1   :  { %1238 = vmatmul.mubr.msk.f32.gmra.mrb[20].mxu1 %vm769_vm11, %v767_v19  ;;  %864 = vmatprep.mubr.f32.mxu0 %v1647_v30  ;;  %v1508_v28 = vpop.eup %1507  ;;  %v702_v12 = vadd.f32 1.0, %v1506_v14  ;;  %1527 = vrcp.f32 %v701_v41 }
 0x1c2   :  { %953 = vmatprep.mubr.f32.mxu1 %v1647_v30  ;;  %v2229_v30 = vpop.f32.mrb[15].mxu0  ;;  %v1510_v1 = vpop.eup %1509  ;;  %v704_v49 = vadd.f32 1.0, %v1508_v28  ;;  %1529 = vrcp.f32 %v703_v20 }
 0x1c3   :  { %v1512_v9 = vpop.eup %1511  ;;  %v705_v57 = vadd.f32 1.0, %v1510_v1  ;;  %1531 = vrcp.f32 %v702_v12  ;;  %v1229_v39 = vmul.f32 -1.442695, %v2229_v30 }
 0x1c4   :  { %1235 = vmatmul.mubr.msk.f32.gmra.mrb[22].mxu0 %vm769_vm11, %v768_v24  ;;  %v1514_v6 = vpop.eup %1513  ;;  %v707_v8 = vadd.f32 1.0, %v1512_v9  ;;  %1533 = vrcp.f32 %v704_v49 }
 0x1c5   :  { %1239 = vmatmul.mubr.msk.f32.gmra.mrb[22].mxu1 %vm769_vm11, %v768_v24  ;;  %v1516_v18 = vpop.eup %1515  ;;  %v706_v46 = vadd.f32 1.0, %v1514_v6  ;;  %1535 = vrcp.f32 %v705_v57 }
 0x1c6   :  { %v1518_v31 = vpop.eup %1517  ;;  %v708_v38 = vadd.f32 1.0, %v1516_v18  ;;  %1537 = vrcp.f32 %v707_v8 }
 0x1c7   :  { %v1520_v29 = vpop.eup %1519  ;;  %v709_v33 = vadd.f32 1.0, %v1518_v31  ;;  %1539 = vrcp.f32 %v706_v46 }
 0x1c8   :  { %v1522_v32 = vpop.eup %1521  ;;  %v711_v26 = vadd.f32 1.0, %v1520_v29  ;;  %1541 = vrcp.f32 %v708_v38 }
 0x1c9   :  { %v1524_v44 = vpop.eup %1523  ;;  %v710_v58 = vadd.f32 1.0, %v1522_v32  ;;  %1543 = vrcp.f32 %v709_v33 }
 0x1ca   :  { %v1526_v15 = vpop.eup %1525  ;;  %v712_v47 = vadd.f32 1.0, %v1524_v44  ;;  %1545 = vrcp.f32 %v711_v26 }
 0x1cb   :  { %v713_v5 = vadd.f32 1.0, %v1526_v15  ;;  %v2234_v51 = vpop.eup %1527  ;;  %1547 = vrcp.f32 %v710_v58 }
 0x1cc   :  { %v2237_v52 = vpop.eup %1529  ;;  %1549 = vrcp.f32 %v712_v47 }
 0x1cd   :  { %v2240_v21 = vpop.eup %1531  ;;  %1551 = vrcp.f32 %v713_v5 }
 0x1ce   :  { %v2242_v13 = vpop.eup %1533  ;;  %1553 = vpow2.f32 %v1230_v50  ;;  %v1088_v50 = vsub.f32 1.0, %v2234_v51 }
 0x1cf   :  { %v2244_v24 = vpop.eup %1535  ;;  %1555 = vpow2.f32 %v1229_v39 }
 0x1d0   :  { %v2246_v23 = vpop.eup %1537  ;;  %1557 = vpow2.f32 %v1231_v53 }
 0x1d1   :  { %v2248_v0 = vpop.eup %1539 }
 0x1d2   :  { %v2250_v16 = vpop.eup %1541 }
 0x1d3   :  { %v2252_v60 = vpop.eup %1543 }
 0x1d4   :  { %v2254_v3 = vpop.eup %1545 }
 0x1d5   :  { %v2256_v36 = vpop.eup %1547 }
 0x1d6   :  { %v2258_v2 = vpop.eup %1549 }
 0x1d7   :  { %v2260_v35 = vpop.eup %1551 }
 0x1d8   :  { %v2262_v11 = vpop.eup %1553 }
 0x1d9   :  { %v2264_v14 = vpop.eup %1555 }
 0x1da   :  { %v2266_v41 = vpop.eup %1557 }
 0x28b   :  { %v848_v19 = vpop.f32.mrb[16].mxu0 }
 0x28c   :  { %v1240_v25 = vmul.f32 -1.442695, %v848_v19  ;;  %v937_v27 = vpop.f32.mrb[16].mxu1  ;;  %v850_v43 = vpop.f32.mrb[17].mxu0  ;;  %v1629_v19 = vld [vmem:[%s2442_s1] sm:$0xff] }
 0x28d   :  { %v1242_v42 = vmul.f32 -1.442695, %v937_v27  ;;  %v1241_v54 = vmul.f32 -1.442695, %v850_v43  ;;  %v939_v48 = vpop.f32.mrb[17].mxu1  ;;  %v1090_v27 = vsub.f32 1.0, %v2237_v52 }
 0x28e   :  { %1559 = vpow2.f32 %v1240_v25  ;;  %v1243_v59 = vmul.f32 -1.442695, %v939_v48  ;;  %v1120_v25 = vmul.f32 %v1629_v19, %v2234_v51  ;;  %v1631_v51 = vld [vmem:[%s2442_s1 + $0x8] sm:$0xff] }
 0x28f   :  { %1561 = vpow2.f32 %v1242_v42  ;;  %v854_v17 = vpop.f32.mrb[18].mxu0 }
 0x290   :  { %1563 = vpow2.f32 %v1241_v54  ;;  %v1244_v61 = vmul.f32 -1.442695, %v854_v17  ;;  %v943_v63 = vpop.f32.mrb[18].mxu1  ;;  %v856_v30 = vpop.f32.mrb[19].mxu0  ;;  %v1630_v54 = vld [vmem:[%s2442_s1 + $0x10] sm:$0xff] }
 0x291   :  { %1565 = vpow2.f32 %v1243_v59  ;;  %v1246_v45 = vmul.f32 -1.442695, %v943_v63  ;;  %v1245_v55 = vmul.f32 -1.442695, %v856_v30  ;;  %v945_v34 = vpop.f32.mrb[19].mxu1  ;;  %v1122_v48 = vmul.f32 %v1630_v54, %v2237_v52  ;;  %v1632_v52 = vld [vmem:[%s2442_s1 + $0x18] sm:$0xff] }
 0x292   :  { %1567 = vpow2.f32 %v1244_v61  ;;  %v1247_v37 = vmul.f32 -1.442695, %v945_v34  ;;  %v1089_v59 = vsub.f32 1.0, %v2240_v21  ;;  %v1121_v63 = vmul.f32 %v1631_v51, %v2240_v21 }
 0x293   :  { %1569 = vpow2.f32 %v1246_v45  ;;  %v860_v56 = vpop.f32.mrb[20].mxu0  ;;  %v1091_v30 = vsub.f32 1.0, %v2242_v13  ;;  %v1123_v34 = vmul.f32 %v1632_v52, %v2242_v13 }
 0x294   :  { %1571 = vpow2.f32 %v1245_v55  ;;  %v1248_v40 = vmul.f32 -1.442695, %v860_v56  ;;  %v949_v62 = vpop.f32.mrb[20].mxu1  ;;  %v862_v7 = vpop.f32.mrb[21].mxu0 }
 0x295   :  { %1573 = vpow2.f32 %v1247_v37  ;;  %v1250_v10 = vmul.f32 -1.442695, %v949_v62  ;;  %v1249_v4 = vmul.f32 -1.442695, %v862_v7  ;;  %v951_v22 = vpop.f32.mrb[21].mxu1  ;;  %v1092_v62 = vsub.f32 1.0, %v2244_v24 }
 0x296   :  { %1575 = vpow2.f32 %v1248_v40  ;;  %v1251_v28 = vmul.f32 -1.442695, %v951_v22 }
 0x297   :  { %1577 = vpow2.f32 %v1250_v10  ;;  %v866_v1 = vpop.f32.mrb[22].mxu0 }
 0x298   :  { %v1560_v20 = vpop.eup %1559  ;;  %1579 = vpow2.f32 %v1249_v4  ;;  %v1252_v9 = vmul.f32 -1.442695, %v866_v1  ;;  %v955_v12 = vpop.f32.mrb[22].mxu1  ;;  %v1633_v4 = vld [vmem:[%s2442_s1 + $0x20] sm:$0xff] }
 0x299   :  { %v868_v6 = vpop.f32.mrb[23].mxu0  ;;  %v1562_v49 = vpop.eup %1561  ;;  %v1024_v18 = vadd.f32 1.0, %v1560_v20  ;;  %1581 = vpow2.f32 %v1251_v28  ;;  %v1254_v56 = vmul.f32 -1.442695, %v955_v12  ;;  %v1124_v22 = vmul.f32 %v1633_v4, %v2244_v24 }
 0x29a   :  { %v957_v57 = vpop.f32.mrb[23].mxu1  ;;  %v1564_v31 = vpop.eup %1563  ;;  %v1026_v8 = vadd.f32 1.0, %v1562_v49  ;;  %1583 = vpow2.f32 %v1252_v9  ;;  %v1253_v21 = vmul.f32 -1.442695, %v868_v6  ;;  %v1094_v20 = vsub.f32 1.0, %v2246_v23  ;;  %v1634_v9 = vld [vmem:[%s2442_s1 + $0x30] sm:$0xff] }
 0x29b   :  { %v1566_v29 = vpop.eup %1565  ;;  %1585 = vrcp.f32 %v1024_v18  ;;  %v1025_v46 = vadd.f32 1.0, %v1564_v31  ;;  %v1255_v28 = vmul.f32 -1.442695, %v957_v57  ;;  %v1126_v12 = vmul.f32 %v1634_v9, %v2246_v23  ;;  %v1635_v23 = vld [vmem:[%s2442_s1 + $0x28] sm:$0xff] }
 0x29c   :  { %v1568_v32 = vpop.eup %1567  ;;  %1587 = vrcp.f32 %v1026_v8  ;;  %v1027_v38 = vadd.f32 1.0, %v1566_v29  ;;  %v1093_v49 = vsub.f32 1.0, %v2248_v0  ;;  %v1125_v8 = vmul.f32 %v1635_v23, %v2248_v0 }
 0x29d   :  { %v1570_v44 = vpop.eup %1569  ;;  %1589 = vrcp.f32 %v1025_v46  ;;  %v1028_v33 = vadd.f32 1.0, %v1568_v32 }
 0x29e   :  { %v1572_v15 = vpop.eup %1571  ;;  %1591 = vrcp.f32 %v1027_v38  ;;  %v1030_v26 = vadd.f32 1.0, %v1570_v44  ;;  %v1095_v38 = vsub.f32 1.0, %v2250_v16 }
 0x29f   :  { %v1574_v58 = vpop.eup %1573  ;;  %1593 = vrcp.f32 %v1028_v33  ;;  %v1029_v47 = vadd.f32 1.0, %v1572_v15 }
 0x2a0   :  { %v1576_v5 = vpop.eup %1575  ;;  %1595 = vrcp.f32 %v1030_v26  ;;  %v1031_v39 = vadd.f32 1.0, %v1574_v58  ;;  %v1096_v58 = vsub.f32 1.0, %v2252_v60 }
 0x2a1   :  { %v1578_v53 = vpop.eup %1577  ;;  %1597 = vrcp.f32 %v1029_v47  ;;  %v1032_v43 = vadd.f32 1.0, %v1576_v5 }
 0x2a2   :  { %v1580_v42 = vpop.eup %1579  ;;  %1599 = vrcp.f32 %v1031_v39  ;;  %v1034_v17 = vadd.f32 1.0, %v1578_v53 }
 0x2a3   :  { %v1582_v61 = vpop.eup %1581  ;;  %1601 = vrcp.f32 %v1032_v43  ;;  %v1033_v45 = vadd.f32 1.0, %v1580_v42 }
 0x2a4   :  { %v1584_v55 = vpop.eup %1583  ;;  %1603 = vrcp.f32 %v1034_v17  ;;  %v1035_v37 = vadd.f32 1.0, %v1582_v61  ;;  %v1097_v17 = vsub.f32 1.0, %v2256_v36  ;;  %v714_v61 = vadd.f32 1.0, %v2264_v14 }
 0x2a5   :  { %v1586_v40 = vpop.eup %1585  ;;  %1605 = vrcp.f32 %v1033_v45  ;;  %v1036_v7 = vadd.f32 1.0, %v1584_v55 }
 0x2a6   :  { %v1588_v10 = vpop.eup %1587  ;;  %1072 = vst [vmem:[%s2445_s4] sm:$0xff] %v1586_v40  ;;  %v1104_v13 = vmul.f32 %v1586_v40, %v1088_v50  ;;  %1607 = vrcp.f32 %v1035_v37  ;;  %v1100_v37 = vsub.f32 1.0, %v2260_v35 }
 0x2a7   :  { %v1590_v1 = vpop.eup %1589  ;;  %1074 = vst [vmem:[%s2445_s4 + $0x10] sm:$0xff] %v1588_v10  ;;  %v1106_v24 = vmul.f32 %v1588_v10, %v1090_v27  ;;  %1609 = vrcp.f32 %v1036_v7 }
 0x2a8   :  { %v1592_v6 = vpop.eup %1591  ;;  %v1136_v18 = vadd.f32 %v1120_v25, %v1104_v13  ;;  %1073 = vst [vmem:[%s2445_s4 + $0x8] sm:$0xff] %v1590_v1  ;;  %v1105_v57 = vmul.f32 %v1590_v1, %v1089_v59  ;;  %1611 = vpow2.f32 %v1254_v56 }
 0x2a9   :  { %v1594_v31 = vpop.eup %1593  ;;  %v1138_v29 = vadd.f32 %v1122_v48, %v1106_v24  ;;  %1075 = vst [vmem:[%s2445_s4 + $0x18] sm:$0xff] %v1592_v6  ;;  %v1107_v46 = vmul.f32 %v1592_v6, %v1091_v30  ;;  %1613 = vpow2.f32 %v1253_v21  ;;  %v716_v30 = vadd.f32 1.0, %v2266_v41 }
 0x2aa   :  { %v1596_v32 = vpop.eup %1595  ;;  %1152 = vst [vmem:[%s2446_s5] sm:$0xff] %v1136_v18  ;;  %v1137_v44 = vadd.f32 %v1121_v63, %v1105_v57  ;;  %1076 = vst [vmem:[%s2445_s4 + $0x20] sm:$0xff] %v1594_v31  ;;  %v1108_v0 = vmul.f32 %v1594_v31, %v1092_v62  ;;  %1615 = vpow2.f32 %v1255_v28  ;;  %v1099_v63 = vsub.f32 1.0, %v2258_v2 }
 0x2ab   :  { %v1598_v33 = vpop.eup %1597  ;;  %v1139_v47 = vadd.f32 %v1123_v34, %v1107_v46  ;;  %1078 = vst [vmem:[%s2445_s4 + $0x30] sm:$0xff] %v1596_v32  ;;  %v1110_v5 = vmul.f32 %v1596_v32, %v1094_v20 }
 0x2ac   :  { %v1600_v50 = vpop.eup %1599  ;;  %v1140_v19 = vadd.f32 %v1124_v22, %v1108_v0  ;;  %1077 = vst [vmem:[%s2445_s4 + $0x28] sm:$0xff] %v1598_v33  ;;  %v1109_v25 = vmul.f32 %v1598_v33, %v1093_v49 }
 0x2ad   :  { %v1602_v27 = vpop.eup %1601  ;;  %v1142_v54 = vadd.f32 %v1126_v12, %v1110_v5  ;;  %1079 = vst [vmem:[%s2445_s4 + $0x38] sm:$0xff] %v1600_v50  ;;  %v1111_v48 = vmul.f32 %v1600_v50, %v1095_v38 }
 0x2ae   :  { %v1604_v59 = vpop.eup %1603  ;;  %1080 = vst [vmem:[%s2445_s4 + $0x40] sm:$0xff] %v1602_v27 }
 0x2af   :  { %v1606_v51 = vpop.eup %1605  ;;  %1082 = vst [vmem:[%s2445_s4 + $0x50] sm:$0xff] %v1604_v59 }
 0x2b0   :  { %v1608_v55 = vpop.eup %1607  ;;  %1081 = vst [vmem:[%s2445_s4 + $0x48] sm:$0xff] %v1606_v51  ;;  %v1113_v56 = vmul.f32 %v1606_v51, %v1097_v17 }
 0x2b1   :  { %v1636_v15 = vld [vmem:[%s2442_s1 + $0x38] sm:$0xff]  ;;  %v1610_v40 = vpop.eup %1609  ;;  %1083 = vst [vmem:[%s2445_s4 + $0x58] sm:$0xff] %v1608_v55  ;;  %v1115_v21 = vmul.f32 %v1608_v55, %v1099_v63 }
 0x2b2   :  { %v1127_v26 = vmul.f32 %v1636_v15, %v2250_v16  ;;  %1154 = vst [vmem:[%s2446_s5 + $0x10] sm:$0xff] %v1138_v29  ;;  %v1098_v16 = vsub.f32 1.0, %v2254_v3  ;;  %v1612_v10 = vpop.eup %1611  ;;  %1084 = vst [vmem:[%s2445_s4 + $0x60] sm:$0xff] %v1610_v40  ;;  %v1116_v13 = vmul.f32 %v1610_v40, %v1100_v37 }
 0x2b3   :  { %v1614_v28 = vpop.eup %1613  ;;  %v1038_v20 = vadd.f32 1.0, %v1612_v10 }
 0x2b4   :  { %v1143_v14 = vadd.f32 %v1127_v26, %v1111_v48  ;;  %v1114_v45 = vmul.f32 %v1604_v59, %v1098_v16  ;;  %v1037_v12 = vadd.f32 1.0, %v1614_v28 }
 0x2b9   :  { %v1637_v39 = vld [vmem:[%s2442_s1 + $0x40] sm:$0xff] }
 0x2ba   :  { %v1128_v53 = vmul.f32 %v1637_v39, %v2252_v60  ;;  %1153 = vst [vmem:[%s2446_s5 + $0x8] sm:$0xff] %v1137_v44  ;;  %v715_v60 = vadd.f32 1.0, %v2262_v11  ;;  %v1112_v11 = vmul.f32 %v1602_v27, %v1096_v58 }
 0x2bc   :  { %v1144_v41 = vadd.f32 %v1128_v53, %v1112_v11  ;;  %1617 = vrcp.f32 %v715_v60 }
 0x2bd   :  { %1619 = vrcp.f32 %v714_v61 }
 0x2be   :  { %1621 = vrcp.f32 %v716_v30 }
 0x2bf   :  { %1623 = vrcp.f32 %v1038_v20 }
 0x2c0   :  { %1625 = vrcp.f32 %v1037_v12 }
 0x2c1   :  { %v1638_v43 = vld [vmem:[%s2442_s1 + $0x50] sm:$0xff] }
 0x2c2   :  { %v1130_v42 = vmul.f32 %v1638_v43, %v2254_v3  ;;  %1155 = vst [vmem:[%s2446_s5 + $0x18] sm:$0xff] %v1139_v47  ;;  %1156 = vst [vmem:[%s2446_s5 + $0x20] sm:$0xff] %v1140_v19  ;;  %v1141_v3 = vadd.f32 %v1125_v8, %v1109_v25 }
 0x2c3   :  { %1158 = vst [vmem:[%s2446_s5 + $0x30] sm:$0xff] %v1142_v54 }
 0x2ca   :  { %v1639_v52 = vld [vmem:[%s2442_s1 + $0x48] sm:$0xff] }
 0x2cb   :  { %v1129_v34 = vmul.f32 %v1639_v52, %v2256_v36  ;;  %1157 = vst [vmem:[%s2446_s5 + $0x28] sm:$0xff] %v1141_v3  ;;  %v1146_v36 = vadd.f32 %v1130_v42, %v1114_v45 }
 0x2d2   :  { %v1640_v62 = vld [vmem:[%s2442_s1 + $0x58] sm:$0xff] }
 0x2d3   :  { %v1131_v7 = vmul.f32 %v1640_v62, %v2258_v2  ;;  %1159 = vst [vmem:[%s2446_s5 + $0x38] sm:$0xff] %v1143_v14  ;;  %v1145_v2 = vadd.f32 %v1129_v34, %v1113_v56 }
 0x2d5   :  { %v1147_v1 = vadd.f32 %v1131_v7, %v1115_v21 }
 0x2da   :  { %v1641_v4 = vld [vmem:[%s2442_s1 + $0x60] sm:$0xff] }
 0x2db   :  { %v1132_v22 = vmul.f32 %v1641_v4, %v2260_v35  ;;  %1160 = vst [vmem:[%s2446_s5 + $0x40] sm:$0xff] %v1144_v41  ;;  %1162 = vst [vmem:[%s2446_s5 + $0x50] sm:$0xff] %v1146_v36  ;;  %v1616_v35 = vpop.eup %1615 }
 0x2dc   :  { %1161 = vst [vmem:[%s2446_s5 + $0x48] sm:$0xff] %v1145_v2  ;;  %1163 = vst [vmem:[%s2446_s5 + $0x58] sm:$0xff] %v1147_v1  ;;  %v1039_v24 = vadd.f32 1.0, %v1616_v35  ;;  %v1618_v6 = vpop.eup %1617 }
 0x2dd   :  { %v1148_v9 = vadd.f32 %v1132_v22, %v1116_v13  ;;  %v1620_v49 = vpop.eup %1619  ;;  %v1102_v57 = vsub.f32 1.0, %v1618_v6 }
 0x2de   :  { %1627 = vrcp.f32 %v1039_v24  ;;  %v1622_v18 = vpop.eup %1621  ;;  %v1101_v23 = vsub.f32 1.0, %v1620_v49 }
 0x2df   :  { %1164 = vst [vmem:[%s2446_s5 + $0x60] sm:$0xff] %v1148_v9  ;;  %v1624_v31 = vpop.eup %1623  ;;  %v1103_v32 = vsub.f32 1.0, %v1622_v18 }
 0x2e0   :  { %v1626_v8 = vpop.eup %1625  ;;  %1086 = vst [vmem:[%s2445_s4 + $0x70] sm:$0xff] %v1624_v31  ;;  %v1118_v38 = vmul.f32 %v1624_v31, %v1102_v57 }
 0x2e1   :  { %1085 = vst [vmem:[%s2445_s4 + $0x68] sm:$0xff] %v1626_v8  ;;  %v1117_v15 = vmul.f32 %v1626_v8, %v1101_v23 }
 0x2e6   :  { %v1642_v29 = vld [vmem:[%s2442_s1 + $0x70] sm:$0xff]  ;;  %v1643_v0 = vld [vmem:[%s2442_s1 + $0x68] sm:$0xff]  ;;  %v1644_v26 = vld [vmem:[%s2442_s1 + $0x78] sm:$0xff] }
 0x2e7   :  { %v1134_v46 = vmul.f32 %v1642_v29, %v1618_v6  ;;  %v1133_v33 = vmul.f32 %v1643_v0, %v1620_v49  ;;  %v1135_v58 = vmul.f32 %v1644_v26, %v1622_v18 }
 0x2e8   :  { %v1628_v44 = vpop.eup %1627 }
 0x2e9   :  { %v1150_v47 = vadd.f32 %v1134_v46, %v1118_v38  ;;  %1087 = vst [vmem:[%s2445_s4 + $0x78] sm:$0xff] %v1628_v44  ;;  %v1119_v5 = vmul.f32 %v1628_v44, %v1103_v32  ;;  %v1149_v50 = vadd.f32 %v1133_v33, %v1117_v15 }
 0x2eb   :  { %1166 = vst [vmem:[%s2446_s5 + $0x70] sm:$0xff] %v1150_v47  ;;  %v1151_v39 = vadd.f32 %v1135_v58, %v1119_v5  ;;  %1165 = vst [vmem:[%s2446_s5 + $0x68] sm:$0xff] %v1149_v50 }
 0x2ed   :  { %1167 = vst [vmem:[%s2446_s5 + $0x78] sm:$0xff] %v1151_v39 }

</bundles_post_ra>
